<compile_context>
chip_gen: v7x
topology: tpu7x:2x2x1
jax: 0.10.0
libtpu: 0.0.40
codegen_flags: <defaults>
</compile_context>

<pallas_src>
import functools

import jax
import jax.numpy as jnp
import numpy as np
from jax.experimental import pallas as pl
from jax.experimental.pallas import tpu as pltpu


# ---------------------------------------------------------------------------
# Fused kernel: conv1x1+BN+ReLU -> GAP -> SE MLP -> channel re-weight ->
#               3x3 conv (im2col matmul) + BN -> residual add -> ReLU
# ---------------------------------------------------------------------------
def _cc_fused_kernel(x_ref, w1_ref, b1_ref, wl1_ref, wl2_ref, w2_ref, b2_ref,
                     mask_ref, o_ref, patches_ref, *, H, W):
    HW = H * W
    Cout = w1_ref.shape[0]

    # Read f32 once from the pipelined block, cast in-register for the MXU
    # (no separate HBM convert pass in the wrapper).
    x = x_ref[0].astype(jnp.bfloat16)                       # (Cin, HW)

    # 1x1 conv (BN scale pre-folded into w1) + bias + ReLU.  bf16 MXU, f32 acc.
    t = jnp.dot(w1_ref[...], x, preferred_element_type=jnp.float32)
    x1 = jnp.maximum(t + b1_ref[...], 0.0)                  # (Cout, HW) f32

    # Squeeze-and-excite, f32 on VPU/XLU (no M=1 MXU matmuls on the tail).
    pooled = jnp.mean(x1, axis=1, keepdims=True)            # (Cout, 1)
    a = jnp.maximum(
        jnp.sum(wl1_ref[...] * pooled, axis=0, keepdims=True), 0.0)   # (1, Cr)
    s = jax.nn.sigmoid(
        jnp.sum(wl2_ref[...] * a, axis=1, keepdims=True))             # (Cout, 1)
    y = x1 * s                                              # (Cout, HW) f32

    # 3x3 SAME conv as one im2col matmul.  Each tap is a static XLU lane
    # rotation of the flat image times a host-precomputed boundary mask
    # (equivalent to zero padding), written straight into bf16 VMEM scratch.
    mask = mask_ref[...]                                    # (9, HW) f32
    for dy in range(3):
        for dx in range(3):
            tap = dy * 3 + dx
            off = (dy - 1) * W + (dx - 1)                   # tap[p] = y[p + off]
            shifted = y if off == 0 else pltpu.roll(y, (-off) % HW, axis=1)
            masked = shifted if off == 0 else shifted * mask[tap:tap + 1, :]
            patches_ref[pl.ds(tap * Cout, Cout), :] = masked.astype(jnp.bfloat16)
    # TODO(synk): cast y to bf16 before the rolls on v6e/v7x (keep f32 on v5e),
    # and at Cout>=128 replace im2col with 9 accumulating matmuls.

    conv2 = jnp.dot(w2_ref[...], patches_ref[...],
                    preferred_element_type=jnp.float32)     # (Cout, HW) f32

    # BN bias (scale folded into w2), residual add (f32), final ReLU,
    # lane-dense bf16 store.
    o_ref[0] = jnp.maximum(y + conv2 + b2_ref[...], 0.0).astype(o_ref.dtype)


# ---------------------------------------------------------------------------
# Host-side precomputed zero-padding masks: (9, H*W), tap = dy*3+dx.
# ---------------------------------------------------------------------------
def _make_tap_mask(H, W):
    hh, ww = np.meshgrid(np.arange(H), np.arange(W), indexing="ij")
    hh = hh.reshape(-1)
    ww = ww.reshape(-1)
    rows = []
    for dy in (-1, 0, 1):
        for dx in (-1, 0, 1):
            valid = ((hh + dy >= 0) & (hh + dy < H) &
                     (ww + dx >= 0) & (ww + dx < W))
            rows.append(valid.astype(np.float32))
    return jnp.asarray(np.stack(rows, axis=0))              # (9, H*W)


# ---------------------------------------------------------------------------
# Wrapper
# ---------------------------------------------------------------------------
def channel_compress_forward(x_nchw, params):
    N, Cin, H, W = x_nchw.shape
    Cout = params["b1"].shape[0]
    Cr = params["wl1"].shape[1]
    HW = H * W

    # NCHW -> (N, Cin, H*W) is a free reshape; stays f32 (cast happens in-kernel).
    x_flat = x_nchw.reshape(N, Cin, HW)
    tap_mask = _make_tap_mask(H, W)

    kernel = functools.partial(_cc_fused_kernel, H=H, W=W)

    # Size the scoped VMEM limit to actual block + scratch usage (+ headroom).
    block_bytes = Cin * HW * 4 + Cout * HW * 2              # x block + out block
    weight_bytes = (Cout * Cin * 2 + Cout * 4 + 2 * Cout * Cr * 4
                    + Cout * 9 * Cout * 2 + Cout * 4 + 9 * HW * 4)
    scratch_bytes = 9 * Cout * HW * 2
    interm_bytes = 4 * Cout * HW * 4                        # x1 / y / conv2 / temps
    est = 2 * (block_bytes + weight_bytes) + scratch_bytes + interm_bytes
    vmem_limit = int(min(max(2 * est, 16 << 20), 64 << 20))

    out = pl.pallas_call(
        kernel,
        out_shape=jax.ShapeDtypeStruct((N, Cout, HW), jnp.bfloat16),
        grid=(N,),
        in_specs=[
            pl.BlockSpec((1, Cin, HW), lambda n: (n, 0, 0)),
            pl.BlockSpec((Cout, Cin), lambda n: (0, 0)),
            pl.BlockSpec((Cout, 1), lambda n: (0, 0)),
            pl.BlockSpec((Cout, Cr), lambda n: (0, 0)),
            pl.BlockSpec((Cout, Cr), lambda n: (0, 0)),
            pl.BlockSpec((Cout, 9 * Cout), lambda n: (0, 0)),
            pl.BlockSpec((Cout, 1), lambda n: (0, 0)),
            pl.BlockSpec((9, HW), lambda n: (0, 0)),
        ],
        out_specs=pl.BlockSpec((1, Cout, HW), lambda n: (n, 0, 0)),
        scratch_shapes=[pltpu.VMEM((9 * Cout, HW), jnp.bfloat16)],
        compiler_params=pltpu.CompilerParams(
            dimension_semantics=("parallel",),
            vmem_limit_bytes=vmem_limit),
    )(x_flat, params["w1"], params["b1"], params["wl1"], params["wl2"],
      params["w2"], params["b2"], tap_mask)

    return out.reshape(N, Cout, H, W)                       # back to NCHW (free)


# ---------------------------------------------------------------------------
# Deterministic synthetic parameters (PyTorch layouts, BN folded, eps = 1e-5)
# ---------------------------------------------------------------------------
def init_params(key, cin, cout):
    ks = jax.random.split(key, 12)
    eps = 1e-5
    cr = cout // 4

    # conv1: (Cout, Cin) [torch Conv2d 1x1 weight squeezed] + BN1
    w1 = jax.random.normal(ks[0], (cout, cin), jnp.float32) * 0.2
    g1 = 1.0 + 0.1 * jax.random.normal(ks[1], (cout,), jnp.float32)
    be1 = 0.1 * jax.random.normal(ks[2], (cout,), jnp.float32)
    mu1 = 0.1 * jax.random.normal(ks[3], (cout,), jnp.float32)
    v1 = 0.5 + jax.random.uniform(ks[4], (cout,), jnp.float32)
    s1 = g1 / jnp.sqrt(v1 + eps)
    b1 = be1 - mu1 * s1

    # SE linears (torch Linear weights are (out_features, in_features))
    wl1_t = jax.random.normal(ks[5], (cr, cout), jnp.float32) * 0.3
    wl2_t = jax.random.normal(ks[6], (cout, cr), jnp.float32) * 0.3

    # conv2: (Cout, Cin=Cout, 3, 3) + BN2
    w2 = jax.random.normal(ks[7], (cout, cout, 3, 3), jnp.float32) * 0.1
    g2 = 1.0 + 0.1 * jax.random.normal(ks[8], (cout,), jnp.float32)
    be2 = 0.1 * jax.random.normal(ks[9], (cout,), jnp.float32)
    mu2 = 0.1 * jax.random.normal(ks[10], (cout,), jnp.float32)
    v2 = 0.5 + jax.random.uniform(ks[11], (cout,), jnp.float32)
    s2 = g2 / jnp.sqrt(v2 + eps)
    b2 = be2 - mu2 * s2

    # Fold BN scales into the conv weights; cast matmul weights to bf16.
    w1f = (w1 * s1[:, None]).astype(jnp.bfloat16)            # (Cout, Cin)
    # im2col weight: row co, column (dy*3+dx)*Cout + ci  (conv2 is Cout->Cout)
    w2f = (jnp.transpose(w2, (0, 2, 3, 1)).reshape(cout, 9 * cout)
           * s2[:, None]).astype(jnp.bfloat16)               # (Cout, 9*Cout)

    return dict(
        w1=w1f,
        b1=b1.reshape(cout, 1).astype(jnp.float32),
        wl1=wl1_t.T.astype(jnp.float32),    # (Cout, Cr)
        wl2=wl2_t.astype(jnp.float32),      # (Cout, Cr)
        w2=w2f,
        b2=b2.reshape(cout, 1).astype(jnp.float32),
    )


# ---------------------------------------------------------------------------
# Plain-JAX f32 reference (uses the same folded weights, promoted to f32)
# ---------------------------------------------------------------------------
def reference(x_nchw, p):
    C = p["b1"].shape[0]
    w1 = p["w1"].astype(jnp.float32)                        # (Cout, Cin)
    x1 = jnp.einsum("oi,nihw->nohw", w1, x_nchw) + p["b1"].reshape(1, C, 1, 1)
    x1 = jnp.maximum(x1, 0.0)

    pooled = jnp.mean(x1, axis=(2, 3))                      # (N, C)
    a = jnp.maximum(pooled @ p["wl1"], 0.0)                 # (N, Cr)
    s = jax.nn.sigmoid(a @ p["wl2"].T)                      # (N, C)
    y = x1 * s[:, :, None, None]

    w2 = p["w2"].astype(jnp.float32).reshape(C, 3, 3, C)    # (Co, dy, dx, Ci)
    w2 = jnp.transpose(w2, (0, 3, 1, 2))                    # OIHW
    c2 = jax.lax.conv_general_dilated(
        y, w2, window_strides=(1, 1), padding="SAME",
        dimension_numbers=("NCHW", "OIHW", "NCHW"))
    c2 = c2 + p["b2"].reshape(1, C, 1, 1)
    return jnp.maximum(y + c2, 0.0)


if __name__ == "__main__":
    key = jax.random.PRNGKey(0)
    kx, kp = jax.random.split(key)

    N, Cin, Cout, H, W = 2, 16, 8, 16, 16   # out_channel divisible by 4

    # PyTorch-style NCHW input — used directly (kernel is channels-first).
    x_nchw = jax.random.normal(kx, (N, Cin, H, W), jnp.float32)
    params = init_params(kp, Cin, Cout)

    out = channel_compress_forward(x_nchw, params)
    out = jax.block_until_ready(out)

    ref = reference(x_nchw, params)
    assert out.shape == ref.shape == (N, Cout, H, W)
    out_f32 = np.asarray(out).astype(np.float32)
    assert np.allclose(out_f32, np.asarray(ref), atol=5e-2, rtol=5e-2), (
        "mismatch vs reference")

    print("KERNEL_OK")
</pallas_src>

<mosaic_0001>
module attributes {stable_mosaic.version = 11 : i64} {
  func.func @_cc_fused_kernel(%arg0: i32, %arg1: memref<1x16x256xf32, #tpu.memory_space<vmem>>, %arg2: memref<8x16xbf16, #tpu.memory_space<vmem>>, %arg3: memref<8x1xf32, #tpu.memory_space<vmem>>, %arg4: memref<8x2xf32, #tpu.memory_space<vmem>>, %arg5: memref<8x2xf32, #tpu.memory_space<vmem>>, %arg6: memref<8x72xbf16, #tpu.memory_space<vmem>>, %arg7: memref<8x1xf32, #tpu.memory_space<vmem>>, %arg8: memref<9x256xf32, #tpu.memory_space<vmem>>, %arg9: memref<1x8x256xbf16, #tpu.memory_space<vmem>>, %arg10: memref<72x256xbf16, #tpu.memory_space<vmem>>) attributes {dimension_semantics = [#tpu.dimension_semantics<parallel>], iteration_bounds = array<i64: 2>, scalar_prefetch = 0 : i64, scratch_operands = 1 : i64, tpu.core_type = #tpu.core_type<tc>, window_params = [{transform_indices = @transform_0, window_bounds = array<i64: 1, 16, 256>}, {pipeline_mode = #tpu.pipeline_mode<synchronous>, transform_indices = @transform_1, window_bounds = array<i64: 8, 16>}, {pipeline_mode = #tpu.pipeline_mode<synchronous>, transform_indices = @transform_2, window_bounds = array<i64: 8, 1>}, {pipeline_mode = #tpu.pipeline_mode<synchronous>, transform_indices = @transform_3, window_bounds = array<i64: 8, 2>}, {pipeline_mode = #tpu.pipeline_mode<synchronous>, transform_indices = @transform_4, window_bounds = array<i64: 8, 2>}, {pipeline_mode = #tpu.pipeline_mode<synchronous>, transform_indices = @transform_5, window_bounds = array<i64: 8, 72>}, {pipeline_mode = #tpu.pipeline_mode<synchronous>, transform_indices = @transform_6, window_bounds = array<i64: 8, 1>}, {pipeline_mode = #tpu.pipeline_mode<synchronous>, transform_indices = @transform_7, window_bounds = array<i64: 9, 256>}, {transform_indices = @transform_8, window_bounds = array<i64: 1, 8, 256>}]} {
    %c0 = arith.constant 0 : index
    %c0_0 = arith.constant 0 : index
    %c0_1 = arith.constant 0 : index
    %0 = vector.load %arg1[%c0, %c0_0, %c0_1] : memref<1x16x256xf32, #tpu.memory_space<vmem>>, vector<1x16x256xf32>
    %1 = vector.shape_cast %0 : vector<1x16x256xf32> to vector<16x256xf32>
    %2 = arith.truncf %1 : vector<16x256xf32> to vector<16x256xbf16>
    %c0_2 = arith.constant 0 : index
    %c0_3 = arith.constant 0 : index
    %3 = vector.load %arg2[%c0_2, %c0_3] : memref<8x16xbf16, #tpu.memory_space<vmem>>, vector<8x16xbf16>
    %cst = arith.constant dense<0.000000e+00> : vector<8x256xf32>
    %4 = tpu.matmul %3, %2, %cst {dimension_numbers = #tpu.dot_dimension_numbers<[1], [0], [0], [1], [0, 0, 1, 1], [], []>} : vector<8x16xbf16>, vector<16x256xbf16>, vector<8x256xf32> -> vector<8x256xf32>
    %c0_4 = arith.constant 0 : index
    %c0_5 = arith.constant 0 : index
    %5 = vector.load %arg3[%c0_4, %c0_5] : memref<8x1xf32, #tpu.memory_space<vmem>>, vector<8x1xf32>
    %6 = vector.broadcast %5 : vector<8x1xf32> to vector<8x256xf32>
    %7 = arith.addf %4, %6 : vector<8x256xf32>
    %cst_6 = arith.constant 0.000000e+00 : f32
    %8 = vector.broadcast %cst_6 : f32 to vector<8x256xf32>
    %9 = arith.maximumf %7, %8 : vector<8x256xf32>
    %cst_7 = arith.constant dense<0.000000e+00> : vector<8xf32>
    %10 = vector.multi_reduction <add>, %9, %cst_7 [1] : vector<8x256xf32> to vector<8xf32>
    %11 = vector.shape_cast %10 : vector<8xf32> to vector<8x1xf32>
    %cst_8 = arith.constant 2.560000e+02 : f32
    %12 = vector.broadcast %cst_8 : f32 to vector<8x1xf32>
    %13 = arith.divf %11, %12 : vector<8x1xf32>
    %c0_9 = arith.constant 0 : index
    %c0_10 = arith.constant 0 : index
    %14 = vector.load %arg4[%c0_9, %c0_10] : memref<8x2xf32, #tpu.memory_space<vmem>>, vector<8x2xf32>
    %15 = vector.broadcast %13 : vector<8x1xf32> to vector<8x2xf32>
    %16 = arith.mulf %14, %15 : vector<8x2xf32>
    %cst_11 = arith.constant dense<0.000000e+00> : vector<2xf32>
    %17 = vector.multi_reduction <add>, %16, %cst_11 [0] : vector<8x2xf32> to vector<2xf32>
    %18 = vector.shape_cast %17 : vector<2xf32> to vector<1x2xf32>
    %cst_12 = arith.constant 0.000000e+00 : f32
    %19 = vector.broadcast %cst_12 : f32 to vector<1x2xf32>
    %20 = arith.maximumf %18, %19 : vector<1x2xf32>
    %c0_13 = arith.constant 0 : index
    %c0_14 = arith.constant 0 : index
    %21 = vector.load %arg5[%c0_13, %c0_14] : memref<8x2xf32, #tpu.memory_space<vmem>>, vector<8x2xf32>
    %22 = vector.broadcast %20 : vector<1x2xf32> to vector<8x2xf32>
    %23 = arith.mulf %21, %22 : vector<8x2xf32>
    %cst_15 = arith.constant dense<0.000000e+00> : vector<8xf32>
    %24 = vector.multi_reduction <add>, %23, %cst_15 [1] : vector<8x2xf32> to vector<8xf32>
    %25 = vector.shape_cast %24 : vector<8xf32> to vector<8x1xf32>
    %26 = arith.negf %25 : vector<8x1xf32>
    %27 = math.exp %26 : vector<8x1xf32>
    %cst_16 = arith.constant 1.000000e+00 : f32
    %28 = vector.broadcast %cst_16 : f32 to vector<8x1xf32>
    %29 = arith.addf %28, %27 : vector<8x1xf32>
    %30 = arith.divf %28, %29 : vector<8x1xf32>
    %31 = vector.broadcast %30 : vector<8x1xf32> to vector<8x256xf32>
    %32 = arith.mulf %9, %31 : vector<8x256xf32>
    %c0_17 = arith.constant 0 : index
    %c0_18 = arith.constant 0 : index
    %33 = vector.load %arg8[%c0_17, %c0_18] : memref<9x256xf32, #tpu.memory_space<vmem>>, vector<9x256xf32>
    %c17_i32 = arith.constant 17 : i32
    %34 = tpu.dynamic_rotate %32 by %c17_i32 dim 1 : vector<8x256xf32>, i32 -> vector<8x256xf32>
    %35 = vector.extract_strided_slice %33 {offsets = [0, 0], sizes = [1, 256], strides = [1, 1]} : vector<9x256xf32> to vector<1x256xf32>
    %36 = vector.broadcast %35 : vector<1x256xf32> to vector<8x256xf32>
    %37 = arith.mulf %34, %36 : vector<8x256xf32>
    %38 = arith.truncf %37 : vector<8x256xf32> to vector<8x256xbf16>
    %c0_19 = arith.constant 0 : index
    %c0_20 = arith.constant 0 : index
    %39 = vector.load %arg10[%c0_19, %c0_20] : memref<72x256xbf16, #tpu.memory_space<vmem>>, vector<8x256xbf16>
    tpu.vector_store %arg10[%c0_19, %c0_20], %38 {strides = array<i32>} : memref<72x256xbf16, #tpu.memory_space<vmem>>, vector<8x256xbf16>,
    %c16_i32 = arith.constant 16 : i32
    %40 = tpu.dynamic_rotate %32 by %c16_i32 dim 1 : vector<8x256xf32>, i32 -> vector<8x256xf32>
    %41 = vector.extract_strided_slice %33 {offsets = [1, 0], sizes = [1, 256], strides = [1, 1]} : vector<9x256xf32> to vector<1x256xf32>
    %42 = vector.broadcast %41 : vector<1x256xf32> to vector<8x256xf32>
    %43 = arith.mulf %40, %42 : vector<8x256xf32>
    %44 = arith.truncf %43 : vector<8x256xf32> to vector<8x256xbf16>
    %c8 = arith.constant 8 : index
    %c0_21 = arith.constant 0 : index
    %45 = vector.load %arg10[%c8, %c0_21] : memref<72x256xbf16, #tpu.memory_space<vmem>>, vector<8x256xbf16>
    tpu.vector_store %arg10[%c8, %c0_21], %44 {strides = array<i32>} : memref<72x256xbf16, #tpu.memory_space<vmem>>, vector<8x256xbf16>,
    %c15_i32 = arith.constant 15 : i32
    %46 = tpu.dynamic_rotate %32 by %c15_i32 dim 1 : vector<8x256xf32>, i32 -> vector<8x256xf32>
    %47 = vector.extract_strided_slice %33 {offsets = [2, 0], sizes = [1, 256], strides = [1, 1]} : vector<9x256xf32> to vector<1x256xf32>
    %48 = vector.broadcast %47 : vector<1x256xf32> to vector<8x256xf32>
    %49 = arith.mulf %46, %48 : vector<8x256xf32>
    %50 = arith.truncf %49 : vector<8x256xf32> to vector<8x256xbf16>
    %c16 = arith.constant 16 : index
    %c0_22 = arith.constant 0 : index
    %51 = vector.load %arg10[%c16, %c0_22] : memref<72x256xbf16, #tpu.memory_space<vmem>>, vector<8x256xbf16>
    tpu.vector_store %arg10[%c16, %c0_22], %50 {strides = array<i32>} : memref<72x256xbf16, #tpu.memory_space<vmem>>, vector<8x256xbf16>,
    %c1_i32 = arith.constant 1 : i32
    %52 = tpu.dynamic_rotate %32 by %c1_i32 dim 1 : vector<8x256xf32>, i32 -> vector<8x256xf32>
    %53 = vector.extract_strided_slice %33 {offsets = [3, 0], sizes = [1, 256], strides = [1, 1]} : vector<9x256xf32> to vector<1x256xf32>
    %54 = vector.broadcast %53 : vector<1x256xf32> to vector<8x256xf32>
    %55 = arith.mulf %52, %54 : vector<8x256xf32>
    %56 = arith.truncf %55 : vector<8x256xf32> to vector<8x256xbf16>
    %c24 = arith.constant 24 : index
    %c0_23 = arith.constant 0 : index
    %57 = vector.load %arg10[%c24, %c0_23] : memref<72x256xbf16, #tpu.memory_space<vmem>>, vector<8x256xbf16>
    tpu.vector_store %arg10[%c24, %c0_23], %56 {strides = array<i32>} : memref<72x256xbf16, #tpu.memory_space<vmem>>, vector<8x256xbf16>,
    %58 = arith.truncf %32 : vector<8x256xf32> to vector<8x256xbf16>
    %c32 = arith.constant 32 : index
    %c0_24 = arith.constant 0 : index
    %59 = vector.load %arg10[%c32, %c0_24] : memref<72x256xbf16, #tpu.memory_space<vmem>>, vector<8x256xbf16>
    tpu.vector_store %arg10[%c32, %c0_24], %58 {strides = array<i32>} : memref<72x256xbf16, #tpu.memory_space<vmem>>, vector<8x256xbf16>,
    %c255_i32 = arith.constant 255 : i32
    %60 = tpu.dynamic_rotate %32 by %c255_i32 dim 1 : vector<8x256xf32>, i32 -> vector<8x256xf32>
    %61 = vector.extract_strided_slice %33 {offsets = [5, 0], sizes = [1, 256], strides = [1, 1]} : vector<9x256xf32> to vector<1x256xf32>
    %62 = vector.broadcast %61 : vector<1x256xf32> to vector<8x256xf32>
    %63 = arith.mulf %60, %62 : vector<8x256xf32>
    %64 = arith.truncf %63 : vector<8x256xf32> to vector<8x256xbf16>
    %c40 = arith.constant 40 : index
    %c0_25 = arith.constant 0 : index
    %65 = vector.load %arg10[%c40, %c0_25] : memref<72x256xbf16, #tpu.memory_space<vmem>>, vector<8x256xbf16>
    tpu.vector_store %arg10[%c40, %c0_25], %64 {strides = array<i32>} : memref<72x256xbf16, #tpu.memory_space<vmem>>, vector<8x256xbf16>,
    %c241_i32 = arith.constant 241 : i32
    %66 = tpu.dynamic_rotate %32 by %c241_i32 dim 1 : vector<8x256xf32>, i32 -> vector<8x256xf32>
    %67 = vector.extract_strided_slice %33 {offsets = [6, 0], sizes = [1, 256], strides = [1, 1]} : vector<9x256xf32> to vector<1x256xf32>
    %68 = vector.broadcast %67 : vector<1x256xf32> to vector<8x256xf32>
    %69 = arith.mulf %66, %68 : vector<8x256xf32>
    %70 = arith.truncf %69 : vector<8x256xf32> to vector<8x256xbf16>
    %c48 = arith.constant 48 : index
    %c0_26 = arith.constant 0 : index
    %71 = vector.load %arg10[%c48, %c0_26] : memref<72x256xbf16, #tpu.memory_space<vmem>>, vector<8x256xbf16>
    tpu.vector_store %arg10[%c48, %c0_26], %70 {strides = array<i32>} : memref<72x256xbf16, #tpu.memory_space<vmem>>, vector<8x256xbf16>,
    %c240_i32 = arith.constant 240 : i32
    %72 = tpu.dynamic_rotate %32 by %c240_i32 dim 1 : vector<8x256xf32>, i32 -> vector<8x256xf32>
    %73 = vector.extract_strided_slice %33 {offsets = [7, 0], sizes = [1, 256], strides = [1, 1]} : vector<9x256xf32> to vector<1x256xf32>
    %74 = vector.broadcast %73 : vector<1x256xf32> to vector<8x256xf32>
    %75 = arith.mulf %72, %74 : vector<8x256xf32>
    %76 = arith.truncf %75 : vector<8x256xf32> to vector<8x256xbf16>
    %c56 = arith.constant 56 : index
    %c0_27 = arith.constant 0 : index
    %77 = vector.load %arg10[%c56, %c0_27] : memref<72x256xbf16, #tpu.memory_space<vmem>>, vector<8x256xbf16>
    tpu.vector_store %arg10[%c56, %c0_27], %76 {strides = array<i32>} : memref<72x256xbf16, #tpu.memory_space<vmem>>, vector<8x256xbf16>,
    %c239_i32 = arith.constant 239 : i32
    %78 = tpu.dynamic_rotate %32 by %c239_i32 dim 1 : vector<8x256xf32>, i32 -> vector<8x256xf32>
    %79 = vector.extract_strided_slice %33 {offsets = [8, 0], sizes = [1, 256], strides = [1, 1]} : vector<9x256xf32> to vector<1x256xf32>
    %80 = vector.broadcast %79 : vector<1x256xf32> to vector<8x256xf32>
    %81 = arith.mulf %78, %80 : vector<8x256xf32>
    %82 = arith.truncf %81 : vector<8x256xf32> to vector<8x256xbf16>
    %c64 = arith.constant 64 : index
    %c0_28 = arith.constant 0 : index
    %83 = vector.load %arg10[%c64, %c0_28] : memref<72x256xbf16, #tpu.memory_space<vmem>>, vector<8x256xbf16>
    tpu.vector_store %arg10[%c64, %c0_28], %82 {strides = array<i32>} : memref<72x256xbf16, #tpu.memory_space<vmem>>, vector<8x256xbf16>,
    %c0_29 = arith.constant 0 : index
    %c0_30 = arith.constant 0 : index
    %84 = vector.load %arg6[%c0_29, %c0_30] : memref<8x72xbf16, #tpu.memory_space<vmem>>, vector<8x72xbf16>
    %c0_31 = arith.constant 0 : index
    %c0_32 = arith.constant 0 : index
    %85 = vector.load %arg10[%c0_31, %c0_32] : memref<72x256xbf16, #tpu.memory_space<vmem>>, vector<72x256xbf16>
    %cst_33 = arith.constant dense<0.000000e+00> : vector<8x256xf32>
    %86 = tpu.matmul %84, %85, %cst_33 {dimension_numbers = #tpu.dot_dimension_numbers<[1], [0], [0], [1], [0, 0, 1, 1], [], []>} : vector<8x72xbf16>, vector<72x256xbf16>, vector<8x256xf32> -> vector<8x256xf32>
    %87 = arith.addf %32, %86 : vector<8x256xf32>
    %c0_34 = arith.constant 0 : index
    %c0_35 = arith.constant 0 : index
    %88 = vector.load %arg7[%c0_34, %c0_35] : memref<8x1xf32, #tpu.memory_space<vmem>>, vector<8x1xf32>
    %89 = vector.broadcast %88 : vector<8x1xf32> to vector<8x256xf32>
    %90 = arith.addf %87, %89 : vector<8x256xf32>
    %cst_36 = arith.constant 0.000000e+00 : f32
    %91 = vector.broadcast %cst_36 : f32 to vector<8x256xf32>
    %92 = arith.maximumf %90, %91 : vector<8x256xf32>
    %93 = arith.truncf %92 : vector<8x256xf32> to vector<8x256xbf16>
    %c0_37 = arith.constant 0 : index
    %c0_38 = arith.constant 0 : index
    %c0_39 = arith.constant 0 : index
    %94 = vector.load %arg9[%c0_37, %c0_38, %c0_39] : memref<1x8x256xbf16, #tpu.memory_space<vmem>>, vector<1x8x256xbf16>
    %95 = vector.shape_cast %94 : vector<1x8x256xbf16> to vector<8x256xbf16>
    %96 = vector.shape_cast %93 : vector<8x256xbf16> to vector<1x8x256xbf16>
    tpu.vector_store %arg9[%c0_37, %c0_38, %c0_39], %96 {strides = array<i32>} : memref<1x8x256xbf16, #tpu.memory_space<vmem>>, vector<1x8x256xbf16>,
    return
  }
  func.func @transform_0(%arg0: i32) -> (i32, i32, i32) {
    %c0_i32 = arith.constant 0 : i32
    %c0_i32_0 = arith.constant 0 : i32
    %c0_i32_1 = arith.constant 0 : i32
    return %arg0, %c0_i32, %c0_i32_0 : i32, i32, i32
  }
  func.func @transform_1(%arg0: i32) -> (i32, i32) {
    %c0_i32 = arith.constant 0 : i32
    %c0_i32_0 = arith.constant 0 : i32
    %c0_i32_1 = arith.constant 0 : i32
    return %c0_i32, %c0_i32_0 : i32, i32
  }
  func.func @transform_2(%arg0: i32) -> (i32, i32) {
    %c0_i32 = arith.constant 0 : i32
    %c0_i32_0 = arith.constant 0 : i32
    %c0_i32_1 = arith.constant 0 : i32
    return %c0_i32, %c0_i32_0 : i32, i32
  }
  func.func @transform_3(%arg0: i32) -> (i32, i32) {
    %c0_i32 = arith.constant 0 : i32
    %c0_i32_0 = arith.constant 0 : i32
    %c0_i32_1 = arith.constant 0 : i32
    return %c0_i32, %c0_i32_0 : i32, i32
  }
  func.func @transform_4(%arg0: i32) -> (i32, i32) {
    %c0_i32 = arith.constant 0 : i32
    %c0_i32_0 = arith.constant 0 : i32
    %c0_i32_1 = arith.constant 0 : i32
    return %c0_i32, %c0_i32_0 : i32, i32
  }
  func.func @transform_5(%arg0: i32) -> (i32, i32) {
    %c0_i32 = arith.constant 0 : i32
    %c0_i32_0 = arith.constant 0 : i32
    %c0_i32_1 = arith.constant 0 : i32
    return %c0_i32, %c0_i32_0 : i32, i32
  }
  func.func @transform_6(%arg0: i32) -> (i32, i32) {
    %c0_i32 = arith.constant 0 : i32
    %c0_i32_0 = arith.constant 0 : i32
    %c0_i32_1 = arith.constant 0 : i32
    return %c0_i32, %c0_i32_0 : i32, i32
  }
  func.func @transform_7(%arg0: i32) -> (i32, i32) {
    %c0_i32 = arith.constant 0 : i32
    %c0_i32_0 = arith.constant 0 : i32
    %c0_i32_1 = arith.constant 0 : i32
    return %c0_i32, %c0_i32_0 : i32, i32
  }
  func.func @transform_8(%arg0: i32) -> (i32, i32, i32) {
    %c0_i32 = arith.constant 0 : i32
    %c0_i32_0 = arith.constant 0 : i32
    %c0_i32_1 = arith.constant 0 : i32
    return %arg0, %c0_i32, %c0_i32_0 : i32, i32, i32
  }
}

</mosaic_0001>

<bundles_post_ra>
// kernel: tpu_custom_call.1
= control target key start
LH: loop header
LB: loop body
LE: loop exit
PB: predicated region body
PF: predicated region fallthrough
CT: control target
= control target key end

     0   :  { %13 = vsyncpa [#allocation4], 0  ;;  %s1383_s0 = inlined_call_operand.hbm [shape: f32[2,16,256], index: 0, kind: input, shape index: {}]   ;;  %s1384_s1 = inlined_call_operand.vmem [shape: bf16[8,16], index: 1, kind: input, shape index: {}]   ;;  %s1385_s2 = inlined_call_operand.vmem [shape: f32[8,1], index: 2, kind: input, shape index: {}]   ;;  %s1386_s3 = inlined_call_operand.vmem [shape: f32[8,2], index: 3, kind: input, shape index: {}]   ;;  %s1387_s4 = inlined_call_operand.vmem [shape: f32[8,2], index: 4, kind: input, shape index: {}]   ;;  %s1388_s5 = inlined_call_operand.vmem [shape: bf16[8,72], index: 5, kind: input, shape index: {}]   ;;  %s1389_s6 = inlined_call_operand.vmem [shape: f32[8,1], index: 6, kind: input, shape index: {}]   ;;  %s1390_s7 = inlined_call_operand.vmem [shape: f32[9,256], index: 7, kind: input, shape index: {}]   ;;  %s1391_s8 = inlined_call_operand.hbm [shape: bf16[2,8,256], index: 8, kind: output, shape index: {}]  }
   0x1   :  { %15 = vsyncpa [#allocation4 + $0x1], 0 }
   0x2   :  { %16 = vsyncpa [#allocation5], 0 }
   0x3   :  { %18 = vsyncpa [#allocation5 + $0x1], 0  ;;  %s1131_s27 = smov 0   ;;  %s1133_s28 = smov 0  }
   0x4   :  { %s1135_s29 = smov 0   ;;  %s1137_s30 = smov 0  }
   0x5 LB: > { %s1152_s9 = sadd.s32 4294967295, %s1071_s30   ;;  %s850_s10 = sadd.s32 4294967294, %s1071_s30   ;;  %s1071_s30 = sphi %s1137_s30, %s1404_s30   ;;  %s1067_s29 = sphi %s1135_s29, %s1403_s29   ;;  %s1063_s28 = sphi %s1133_s28, %s1402_s28   ;;  %s1059_s27 = sphi %s1131_s27, %s1401_s27  }
   0x6   : > { %s1156_s11 = sadd.s32 1, %s1071_s30   ;;  %s31_s12 = sadd.s32 1, %s1067_s29 }
   0x7   : > { %s28_s13 = ssub.s32 %s1071_s30, %s1156_s11  ;;  %p38_p0 = scmp.ne.s32.totalorder %s1067_s29, %s1063_s28 }
   0x8   : > { %p29_p1 = scmp.eq.s32.totalorder %s28_s13, 0  ;;  %p39_p2 = scmp.eq.s32.totalorder %s1071_s30, 0 }
   0x9   : > { %p44_p3 = scmp.ne.s32.totalorder %s1063_s28, %s1059_s27  ;;  %p45_p4 = scmp.eq.s32.totalorder %s1152_s9, 0 }
   0xa   : > { %s1168_s14 = scalar_select %p29_p1, %s1067_s29, %s31_s12  }
   0xb   : > { %p1170_p5 = por %p39_p2, %p38_p0  ;;  %p1174_p6 = por %p45_p4, %p44_p3 }
   0xc   : > { %p215_p7 = scmp.eq.s32.totalorder %s1152_s9, 1  ;;  %p221_p8 = scmp.eq.s32.totalorder %s850_s10, 1 }
   0xd   : > { %p924_p10 = scmp.lt.s32.totalorder %s1071_s30, 2  ;;  %s262_s19 = sand.u32 1, %s1067_s29  }
   0xe   : > { %p1181_p11 = por %p215_p7, %p38_p0  ;;  %p1185_p12 = por %p221_p8, %p44_p3 }
   0xf   : > { %s890_s20 = sshll.u32 %s1071_s30, 9  ;;  %s853_s21 = sshll.u32 %s262_s19, 5 }
  0x10   : > { %s1395_s17 = scalar_select %p1181_p11, 1, 0 }
  0x11   : > { %s1396_s18 = scalar_select %p1185_p12, 1, 0 }
  0x12   : > { %s1194_s24 = scalar_lea.hbm %s1383_s0, %s890_s20  ;;  %s266_s25 = scalar_lea.vmem [#allocation3], %s853_s21 }
  0x13   : > { %s273_s26 = sshll.u32 %s266_s25, 4  ;;  %p1198_p13 = pnand %p924_p10, %p1170_p5  ;;  %s1202_s26 = int_to_ptr.vmem [resolvable:$true] %s273_s26 }
  0x14   : > { %s1204_s12 = scalar_lea.sflag [#allocation4], %s262_s19  ;;  %s975_s13 = scalar_lea.hbm %s1194_s24, 512 }
  0x15   : > { %p976_p0 = scmp.ne.s32.totalorder %s1194_s24, %s975_s13  ;;  %p977_p1 = pneg %p1198_p13 }
  0x16   : > { %s980_s21 = scalar_lea.hbm %s1383_s0, 1024  ;;  %p981_p4 = scmp.lt.u32.totalorder %s1194_s24, %s1383_s0 }
  0x17   : > { %p978_p2 = pnand %p977_p1, %p976_p0  ;;  %p982_p5 = scmp.lt.u32.totalorder %s980_s21, %s975_s13 }
  0x18   : > { %p984_p8 = scmp.lt.u32.totalorder %s975_s13, %s1194_s24 }
  0x19   : > { %p979_p3 = pneg %p978_p2  ;;  %p983_p7 = por %p982_p5, %p981_p4 }
  0x1b   : > { %p985_p10 = por %p984_p8, %p983_p7 }
  0x1d   : > { %p986_p9 = pnand %p985_p10, %p979_p3 }
  0x1f   : > { %989 = shalt.err (!%p986_p9)
}
  0x20   : > { %s990_s19 = scalar_lea.vmem %s1202_s26, 512  ;;  %s1073_s25 = smov [#allocation3]  }
  0x21   : > { %p991_p0 = scmp.ne.s32.totalorder %s1202_s26, %s990_s19  ;;  %s995_s20 = sshll.u32 %s1073_s25, 4  ;;  %s996_s20 = int_to_ptr.vmem [resolvable:$false] %s995_s20 }
  0x22   : > { %s997_s15 = scalar_lea.vmem %s996_s20, 1024  ;;  %p998_p11 = scmp.lt.s32.totalorder %s1202_s26, %s996_s20 }
  0x23   : > { %p993_p2 = pnand %p991_p0, %p977_p1  ;;  %p999_p4 = scmp.lt.s32.totalorder %s997_s15, %s990_s19 }
  0x25   : > { %p994_p12 = pneg %p993_p2  ;;  %p1000_p5 = por %p999_p4, %p998_p11 }
  0x27   : > { %p1001_p7 = pnand %p1000_p5, %p994_p12 }
  0x29   : > { %1004 = shalt.err (!%p1001_p7)
}
  0x2a   : > { %s1074_s13 = smov 256   ;;  %s1075_s21 = smov 16  }
  0x2b   : > { %919 = dma.hbm_to_vmem [thread:$0]  (!%p1198_p13), %s1194_s24, 512, %s1202_s26, %s1204_s12, %s1074_s13, %s1074_s13, %s1075_s21  }
  0x2c   : > { %p856_p9 = scmp.ge.s32.totalorder %s1071_s30, 1  ;;  %p281_p1 = scmp.lt.s32.totalorder %s1071_s30, 3 }
  0x2e   : > { %p282_p3 = pnand %p856_p9, %p281_p1 }
  0x2f   : > { %s1235_s22 = sand.u32 (!%p282_p3), 1, %s1063_s28  }
  0x30   : > { %285 = sbr.rel (%p282_p3) target bundleno = 1019 (0x3fb), region = 52  ;;  %s857_s23 = sshll.u32 (!%p282_p3), %s1235_s22, 5 }
  0x31   : > { %s288_s19 = scalar_lea.sflag (!%p282_p3), [#allocation4], %s1235_s22  ;;  %s291_s25 = scalar_lea.vmem (!%p282_p3), [#allocation3], %s857_s23 }
  0x37   : > { %1050 = dma.done.wait (%p1174_p6), %s288_s19, 512  }
  0x38   : > { %1052 = vsyncadd (%p1174_p6), %s288_s19, 4294966784  ;;  %v1076_v0 = vmov 0   ;;  %v326_v1 = vld [vmem:[%s291_s25 + $0x8] sm:$0xff]  ;;  %v328_v2 = vld [vmem:[%s291_s25 + $0x18] sm:$0xff]  ;;  %vm338_vm0 = vcmask 130048   ;;  %vm392_vm1 = vcmask 15360   ;;  %v422_v42 = vlaneseq }
  0x39   : > { %374 = vmatprep.mubr.bf16.mxu0 %v1076_v0  ;;  %969 = vset.pattern.permute.xlu0 %v1076_v0  ;;  %v325_v3 = vld [vmem:[%s291_s25] sm:$0xff]  ;;  %v330_v4 = vpack.c.bf16 %v328_v2, %v326_v1  ;;  %v327_v5 = vld [vmem:[%s291_s25 + $0x10] sm:$0xff]  ;;  %s1077_s21 = smov 15   ;;  %s1078_s23 = smov 17   ;;  %v1292_v50 = vld [vmem:[%s1390_s7 + $0x8] sm:$0xff]  ;;  %vm696_vm10 = vcmask 1043456  }
  0x3a   : > { %735 = vmatprep.mubr.bf16.mxu1 %v1076_v0  ;;  %970 = vset.pattern.permute.xlu1 %v1076_v0  ;;  %v332_v6 = vld [vmem:[%s1385_s2] sm:$0xff]  ;;  %v329_v7 = vpack.c.bf16 %v327_v5, %v325_v3  ;;  %s1079_s19 = smov 113   ;;  %s1080_s25 = smov 112   ;;  %v1278_v44 = vshrl.u32 %v422_v42, 7  ;;  %v1280_v45 = vand.u32 127, %v422_v42  ;;  %vm692_vm11 = vcmask 588800  }
  0x3b   : > { %335 = vperm.xlu0 %969, %v332_v6   ;;  %342 = vmatprep.subr.bf16.mxu0 %v330_v4  ;;  %v331_v8 = vld [vmem:[%s1384_s1] sm:$0xf]  ;;  %s1081_s24 = smov 16   ;;  %s1082_s26 = smov 111  }
  0x3c   : > { %343 = vmatpush1.bf16.msra.mxu0 %v329_v7  ;;  %v390_v19 = vld [vmem:[%s1386_s3] sm:$0xff]  ;;  %s1083_s16 = smov 1   ;;  %s1084_s10 = smov 127   ;;  %v429_v47 = vsub.s32 0, %v1278_v44  ;;  %v455_v49 = vsub.s32 1, %v1278_v44  ;;  %vm424_vm2 = vcmp.lt.s32.totalorder %v1280_v45, 17 }
  0x3d   : > { %v401_v30 = vld [vmem:[%s1387_s4] sm:$0xff]  ;;  %vm450_vm3 = vcmp.lt.s32.totalorder %v1280_v45, 16  ;;  %v481_v4 = vsub.s32 2, %v1278_v44  ;;  %v507_v5 = vsub.s32 3, %v1278_v44  ;;  %vm476_vm4 = vcmp.lt.s32.totalorder %v1280_v45, 15  ;;  %s858_s12 = sshll.u32 %s1235_s22, 3 }
  0x3e   : > { %v746_v41 = vld [vmem:[%s1389_s6] sm:$0xff]  ;;  %v434_v54 = vrot.slane %v1292_v50, %v429_v47  ;;  %v460_v55 = vrot.slane %v1292_v50, %v455_v49  ;;  %vm502_vm5 = vcmp.lt.s32.totalorder %v1280_v45, 1  ;;  %vm537_vm6 = vcmp.lt.s32.totalorder %v1280_v45, 127  ;;  %s901_s20 = sshll.u32 %s1152_s9, 7  ;;  %s323_s15 = scalar_lea.vmem [#allocation6], %s858_s12 }
  0x3f   : > { %859 = vmatmul.mubr.msk.bf16.vlgmr.msra.gmra.mrb[0].mxu0 %vm338_vm0, %v331_v8  ;;  %v1286_v48 = vld [vmem:[%s1390_s7] sm:$0xff]  ;;  %vm563_vm7 = vcmp.lt.s32.totalorder %v1280_v45, 113  ;;  %vm589_vm8 = vcmp.lt.s32.totalorder %v1280_v45, 112  ;;  %vm615_vm9 = vcmp.lt.s32.totalorder %v1280_v45, 111  ;;  %s780_s13 = sshll.u32 %s323_s15, 4  ;;  %p1398_p11 = scmp.ne.s32.totalorder %s1395_s17, 0  ;;  %s1341_s13 = int_to_ptr.vmem [resolvable:$true] %s780_s13 }
  0x40   : > { %v430_v52 = vrot.slane %v1286_v48, %v429_v47  ;;  %v456_v53 = vrot.slane %v1286_v48, %v455_v49  ;;  %v482_v7 = vrot.slane %v1286_v48, %v481_v4  ;;  %s1085_s9 = smov [#allocation6]  }
  0xba   : > { %v336_v9 = vpop.permute.xlu0 %335 }
 0x112   : > { %v376_v10 = vpop.f32.mrb[0].mxu0 }
 0x113   : > { %v377_v11 = vadd.f32 %v376_v10, %v336_v9  ;;  %v378_v12 = vpop.f32.mrb[1].mxu0  ;;  %v508_v10 = vrot.slane %v1286_v48, %v507_v5 }
 0x114   : > { %v379_v13 = vadd.f32 %v378_v12, %v336_v9  ;;  %v380_v14 = vpop.f32.mrb[2].mxu0  ;;  %v486_v9 = vrot.slane %v1292_v50, %v481_v4 }
 0x115   : > { %v383_v15 = vmax.f32 %v377_v11, 0.0  ;;  %v381_v16 = vpop.f32.mrb[3].mxu0  ;;  %v512_v11 = vrot.slane %v1292_v50, %v507_v5 }
 0x116   : > { %v384_v17 = vmax.f32 %v379_v13, 0.0 }
 0x118   : > { %v385_v18 = vadd.f32 %v384_v17, %v383_v15 }
 0x11a   : > { %386 = vadd.xlane.f32.xlu0 %v385_v18 }
 0x1a7   : > { %v387_v20 = vpop.xlane.xlu0 %386 }
 0x1a8   : > { %v389_v21 = vmul.f32 0.00390625, %v387_v20 }
 0x1aa   : > { %v391_v22 = vmul.f32 %v390_v19, %v389_v21 }
 0x1ac   : > { %v393_v23 = vsel %vm392_vm1, %v391_v22, 0.0 }
 0x1ad   : > { %v394_v24 = vrot.slane %v393_v23, 4 }
 0x1af   : > { %v395_v25 = vadd.f32 %v394_v24, %v393_v23 }
 0x1b1   : > { %v396_v26 = vrot.slane %v395_v25, 2 }
 0x1b3   : > { %v397_v27 = vadd.f32 %v396_v26, %v395_v25 }
 0x1b5   : > { %v398_v28 = vrot.slane %v397_v27, 1 }
 0x1b7   : > { %v399_v29 = vadd.f32 %v398_v28, %v397_v27 }
 0x1b9   : > { %v400_v31 = vmax.f32 %v399_v29, 0.0 }
 0x1bb   : > { %v402_v32 = vmul.f32 %v401_v30, %v400_v31  ;;  %v568_v31 = vsub.s32 6, %v1278_v44 }
 0x1bd   : > { %v403_v33 = vsel %vm392_vm1, %v402_v32, 0.0  ;;  %v573_v42 = vrot.slane %v1292_v50, %v568_v31 }
 0x1be   : > { %404 = vadd.xlane.f32.xlu1 %v403_v33 }
 0x24b   : > { %v405_v34 = vpop.xlane.xlu1 %404 }
 0x24c   : > { %v860_v35 = vmul.f32 -1.442695, %v405_v34  ;;  %v594_v34 = vsub.s32 7, %v1278_v44 }
 0x24e   : > { %971 = vpow2.f32 %v860_v35 }
 0x258   : > { %v972_v36 = vpop.eup %971 }
 0x259   : > { %v409_v37 = vadd.f32 1.0, %v972_v36 }
 0x25b   : > { %973 = vrcp.f32 %v409_v37 }
 0x265   : > { %v974_v38 = vpop.eup %973 }
 0x266   : > { %v1255_v39 = vmul.f32 %v974_v38, %v383_v15  ;;  %v1257_v40 = vmul.f32 %v974_v38, %v384_v17  ;;  %v542_v17 = vsub.s32 5, %v1278_v44  ;;  %v569_v38 = vrot.slane %v1286_v48, %v568_v31 }
 0x268   : > { %474 = vrot.lane.b32.xlu0 %v1257_v40, %s1077_s21  ;;  %418 = vrot.lane.b32.xlu1 %v1255_v39, %s1078_s23  ;;  %v543_v25 = vrot.slane %v1286_v48, %v542_v17  ;;  %v547_v26 = vrot.slane %v1292_v50, %v542_v17 }
 0x26c   : > { %561 = vrot.lane.b32.xlu0 %v1257_v40, %s1079_s19  ;;  %420 = vrot.lane.b32.xlu1 %v1257_v40, %s1078_s23 }
 0x270   : > { %587 = vrot.lane.b32.xlu0 %v1257_v40, %s1080_s25  ;;  %446 = vrot.lane.b32.xlu1 %v1255_v39, %s1081_s24 }
 0x274   : > { %613 = vrot.lane.b32.xlu0 %v1257_v40, %s1082_s26  ;;  %448 = vrot.lane.b32.xlu1 %v1257_v40, %s1081_s24  ;;  %s1005_s24 = scalar_lea.vmem %s1341_s13, 128 }
 0x275   : > { %p1006_p6 = scmp.ne.s32.totalorder %s1341_s13, %s1005_s24 }
 0x277   : > { %p1007_p12 = pnand %p1006_p6, %p1398_p11 }
 0x278   : > { %472 = vrot.lane.b32.xlu1 %v1255_v39, %s1077_s21 }
 0x279   : > { %p1008_p13 = pneg %p1007_p12 }
 0x27c   : > { %498 = vrot.lane.b32.xlu1 %v1255_v39, %s1083_s16 }
 0x280   : > { %500 = vrot.lane.b32.xlu1 %v1257_v40, %s1083_s16 }
 0x284   : > { %533 = vrot.lane.b32.xlu1 %v1255_v39, %s1084_s10 }
 0x288   : > { %535 = vrot.lane.b32.xlu1 %v1257_v40, %s1084_s10 }
 0x28c   : > { %559 = vrot.lane.b32.xlu1 %v1255_v39, %s1079_s19  ;;  %s1339_s19 = scalar_lea.hbm %s1391_s8, %s901_s20 }
 0x290   : > { %585 = vrot.lane.b32.xlu1 %v1255_v39, %s1080_s25  ;;  %s766_s25 = scalar_lea.sflag [#allocation5], %s1235_s22 }
 0x294   : > { %611 = vrot.lane.b32.xlu1 %v1255_v39, %s1082_s26  ;;  %s1009_s26 = sshll.u32 %s1085_s9, 4  ;;  %s1010_s26 = int_to_ptr.vmem [resolvable:$false] %s1009_s26 }
 0x295   : > { %s1011_s16 = scalar_lea.vmem %s1010_s26, 256  ;;  %p1012_p8 = scmp.lt.s32.totalorder %s1341_s13, %s1010_s26 }
 0x296   : > { %p1013_p10 = scmp.lt.s32.totalorder %s1011_s16, %s1005_s24 }
 0x298   : > { %749 = vperm.xlu1 %970, %v746_v41   ;;  %p1014_p0 = por %p1013_p10, %p1012_p8 }
 0x29a   : > { %p1015_p2 = pnand %p1014_p0, %p1008_p13 }
 0x2da   : > { %v419_v43 = vpop.permute.xlu1 %418  ;;  %v475_v8 = vpop.permute.xlu0 %474 }
 0x2de   : > { %v421_v46 = vpop.permute.xlu1 %420  ;;  %v562_v27 = vpop.permute.xlu0 %561 }
 0x2df   : > { %v425_v56 = vsel %vm424_vm2, %v419_v43, %v421_v46  ;;  %v426_v57 = vsel %vm424_vm2, %v421_v46, %v419_v43  ;;  %v595_v43 = vrot.slane %v1286_v48, %v594_v34  ;;  %v599_v46 = vrot.slane %v1292_v50, %v594_v34  ;;  %v870_v48 = vld [vmem:[%s1390_s7 + $0x18] ss:$0 sm:$0xff] }
 0x2e0   : > { %v435_v61 = vmul.f32 %v430_v52, %v426_v57  ;;  %v436_v63 = vmul.f32 %v434_v54, %v425_v56  ;;  %v869_v57 = vld [vmem:[%s1390_s7 + $0x10] ss:$0 sm:$0xff] }
 0x2e2   : > { %v447_v51 = vpop.permute.xlu1 %446  ;;  %v588_v41 = vpop.permute.xlu0 %587 }
 0x2e6   : > { %v449_v58 = vpop.permute.xlu1 %448  ;;  %v614_v50 = vpop.permute.xlu0 %613 }
 0x2e7   : > { %v451_v59 = vsel %vm450_vm3, %v447_v51, %v449_v58  ;;  %v452_v60 = vsel %vm450_vm3, %v449_v58, %v447_v51 }
 0x2e8   : > { %v461_v62 = vmul.f32 %v456_v53, %v452_v60  ;;  %v462_v0 = vmul.f32 %v460_v55, %v451_v59 }
 0x2ea   : > { %v473_v1 = vpop.permute.xlu1 %472  ;;  %v903_v2 = vpack.c.bf16 %v462_v0, %v436_v63  ;;  %v902_v3 = vpack.c.bf16 %v461_v62, %v435_v61 }
 0x2eb   : > { %v477_v12 = vsel %vm476_vm4, %v473_v1, %v475_v8  ;;  %v478_v13 = vsel %vm476_vm4, %v475_v8, %v473_v1 }
 0x2ec   : > { %703 = vmatprep.subr.bf16.mxu1 %v903_v2  ;;  %v487_v18 = vmul.f32 %v482_v7, %v478_v13  ;;  %v488_v19 = vmul.f32 %v486_v9, %v477_v12 }
 0x2ed   : > { %704 = vmatpush1.bf16.msra.mxu1 %v902_v3  ;;  %v637_v3 = vld [vmem:[%s1388_s5] sm:$0xf] }
 0x2ee   : > { %v499_v6 = vpop.permute.xlu1 %498 }
 0x2f2   : > { %v501_v14 = vpop.permute.xlu1 %500 }
 0x2f3   : > { %v503_v15 = vsel %vm502_vm5, %v499_v6, %v501_v14  ;;  %v504_v16 = vsel %vm502_vm5, %v501_v14, %v499_v6 }
 0x2f4   : > { %v513_v20 = vmul.f32 %v508_v10, %v504_v16  ;;  %v514_v21 = vmul.f32 %v512_v11, %v503_v15 }
 0x2f6   : > { %v534_v22 = vpop.permute.xlu1 %533  ;;  %v905_v23 = vpack.c.bf16 %v514_v21, %v488_v19  ;;  %v904_v24 = vpack.c.bf16 %v513_v20, %v487_v18 }
 0x2f8   : > { %705 = vmatprep.subr.bf16.mxu1 %v905_v23 }
 0x2f9   : > { %706 = vmatpush1.bf16.msra.mxu1 %v904_v24 }
 0x2fa   : > { %v536_v28 = vpop.permute.xlu1 %535 }
 0x2fb   : > { %v538_v29 = vsel %vm537_vm6, %v534_v22, %v536_v28  ;;  %v539_v30 = vsel %vm537_vm6, %v536_v28, %v534_v22 }
 0x2fc   : > { %v548_v32 = vmul.f32 %v543_v25, %v538_v29  ;;  %v549_v33 = vmul.f32 %v547_v26, %v539_v30 }
 0x2fe   : > { %v560_v35 = vpop.permute.xlu1 %559  ;;  %v907_v36 = vpack.c.bf16 %v549_v33, %v1257_v40  ;;  %v906_v37 = vpack.c.bf16 %v548_v32, %v1255_v39 }
 0x2ff   : > { %v564_v44 = vsel %vm563_vm7, %v560_v35, %v562_v27  ;;  %v565_v47 = vsel %vm563_vm7, %v562_v27, %v560_v35 }
 0x300   : > { %707 = vmatprep.subr.bf16.mxu1 %v907_v36  ;;  %v574_v53 = vmul.f32 %v569_v38, %v564_v44  ;;  %v575_v54 = vmul.f32 %v573_v42, %v565_v47 }
 0x301   : > { %708 = vmatpush1.bf16.msra.mxu1 %v906_v37 }
 0x302   : > { %v586_v49 = vpop.permute.xlu1 %585 }
 0x303   : > { %v590_v51 = vsel %vm589_vm8, %v586_v49, %v588_v41  ;;  %v591_v52 = vsel %vm589_vm8, %v588_v41, %v586_v49 }
 0x304   : > { %v600_v55 = vmul.f32 %v595_v43, %v590_v51  ;;  %v601_v56 = vmul.f32 %v599_v46, %v591_v52 }
 0x306   : > { %v612_v58 = vpop.permute.xlu1 %611  ;;  %v909_v59 = vpack.c.bf16 %v601_v56, %v575_v54  ;;  %v908_v60 = vpack.c.bf16 %v600_v55, %v574_v53 }
 0x307   : > { %v616_v61 = vsel %vm615_vm9, %v612_v58, %v614_v50  ;;  %v617_v62 = vsel %vm615_vm9, %v614_v50, %v612_v58 }
 0x308   : > { %v626_v45 = vmul.f32 %v869_v57, %v616_v61  ;;  %v627_v63 = vmul.f32 %v870_v48, %v617_v62  ;;  %709 = vmatprep.subr.bf16.mxu1 %v909_v59 }
 0x309   : > { %710 = vmatpush1.bf16.msra.mxu1 %v908_v60 }
 0x30a   : > { %v910_v0 = vpack.c.bf16 %v626_v45, %v626_v45  ;;  %v911_v1 = vpack.c.bf16 %v627_v63, %v627_v63 }
 0x30c   : > { %882 = vmatprep.subr.msk.bf16.mxu1 %vm696_vm10, %v911_v1  ;;  %v698_v2 = vsel %vm696_vm10, %v910_v0, 0 }
 0x30d   : > { %712 = vmatpush1.bf16.msra.mxu1 %v698_v2 }
 0x310   : > { %883 = vmatmul.mubr.msk.bf16.vlgmr.msra.gmra.mrb[0].mxu1 %vm692_vm11, %v637_v3 }
 0x317   : > { %v750_v5 = vpop.permute.xlu1 %749 }
 0x3e3   : > { %v737_v4 = vpop.f32.mrb[0].mxu1 }
 0x3e4   : > { %v744_v6 = vadd.f32 %v737_v4, %v1255_v39  ;;  %v739_v7 = vpop.f32.mrb[1].mxu1 }
 0x3e5   : > { %v745_v8 = vadd.f32 %v739_v7, %v1257_v40  ;;  %v741_v9 = vpop.f32.mrb[2].mxu1 }
 0x3e6   : > { %v752_v10 = vadd.f32 %v750_v5, %v744_v6  ;;  %v742_v11 = vpop.f32.mrb[3].mxu1 }
 0x3e7   : > { %v753_v12 = vadd.f32 %v750_v5, %v745_v8 }
 0x3e8   : > { %v754_v13 = vmax.f32 %v752_v10, 0.0 }
 0x3e9   : > { %v755_v14 = vmax.f32 %v753_v12, 0.0 }
 0x3eb   : > { %v900_v15 = vpack.c.bf16 %v755_v14, %v754_v13 }
 0x3ed   : > { %764 = vst [vmem:[%s323_s15] sm:$0xff] %v900_v15 }
 0x3ee   : > { %1018 = shalt.err (!%p1015_p2)
}
 0x3ef   : > { %s1019_s22 = scalar_lea.hbm %s1339_s19, 128  ;;  %s1023_s20 = scalar_lea.hbm %s1391_s8, 256 }
 0x3f0   : > { %p1020_p4 = scmp.ne.s32.totalorder %s1339_s19, %s1019_s22  ;;  %p1024_p9 = scmp.lt.u32.totalorder %s1339_s19, %s1391_s8 }
 0x3f1   : > { %p1025_p1 = scmp.lt.u32.totalorder %s1023_s20, %s1019_s22  ;;  %p1027_p6 = scmp.lt.u32.totalorder %s1019_s22, %s1339_s19 }
 0x3f2   : > { %p1021_p5 = pnand %p1020_p4, %p1398_p11 }
 0x3f3   : > { %p1026_p3 = por %p1025_p1, %p1024_p9 }
 0x3f4   : > { %p1022_p7 = pneg %p1021_p5 }
 0x3f5   : > { %p1028_p12 = por %p1027_p6, %p1026_p3 }
 0x3f7   : > { %p1029_p13 = pnand %p1028_p12, %p1022_p7 }
 0x3f9   : > { %1032 = shalt.err (!%p1029_p13)
}
 0x3fa   : > { %914 = dma.vmem_to_hbm [thread:$0]  (%p1398_p11), %s1341_s13, 128, %s1339_s19, %s766_s25  }
 0x3fb PF: > { %s792_s23 = sand.u32 1, %s1059_s27   ;;  %p1399_p8 = scmp.ne.s32.totalorder %s1396_s18, 0 }
 0x3fc   : > { %p1400_p10 = scmp.ge.s32.totalorder %s1071_s30, 2  ;;  %s793_s24 = scalar_lea.sflag [#allocation5], %s792_s23 }
 0x3fe   : > { %p921_p0 = pnand %p1400_p10, %p1399_p8 }
 0x400   : > { %1054 = dma.done.wait (!%p921_p0), %s793_s24, 128  }
 0x401   : > { %1056 = vsyncadd (!%p921_p0), %s793_s24, 4294967168  ;;  %p21_p2 = scmp.ge.s32.totalorder %s1156_s11, 4   ;;  %s1401_s27 = smov %s1063_s28 }
 0x402   : > { %s1402_s28 = smov %s1067_s29  ;;  %s1403_s29 = smov %s1168_s14 }
 0x403   : > { %s1404_s30 = smov %s1156_s11  ;;  %23 = sbr.rel (!%p21_p2) target bundleno = 5 (0x5), region = 97 }
 0x40a   :  { %798 = vsyncpa [#allocation4], 1 }
 0x40b   :  { %800 = vsyncpa [#allocation4 + $0x1], 1 }
 0x40c   :  { %801 = vsyncpa [#allocation5], 1 }
 0x40d   :  { %803 = vsyncpa [#allocation5 + $0x1], 1 }

</bundles_post_ra>
